<compile_context>
chip_gen: v7x
topology: tpu7x:2x2x1
jax: 0.10.0
libtpu: 0.0.40
codegen_flags: <defaults>
</compile_context>

<pallas_src>
import functools

import jax
import jax.numpy as jnp
from jax import lax
from jax.experimental import pallas as pl
from jax.experimental.pallas import tpu as pltpu


# ----------------------------------------------------------------------------- helpers

def _round_up(n, m):
    return ((n + m - 1) // m) * m


def _largest_divisor(n, candidates):
    for c in candidates:
        if c <= n and n % c == 0:
            return c
    return 1


def _vmem_caps():
    """Returns (physical VMEM bytes, soft per-call cap leaving headroom)."""
    cap = 64 * 1024 * 1024  # conservative default (v7x-sized) if the query fails
    try:
        info = pltpu.get_tpu_info()
        cap = int(getattr(info, "vmem_capacity_bytes", cap))
    except Exception:
        pass
    soft = max(24 * 1024 * 1024, min(cap - 16 * 1024 * 1024, 100 * 1024 * 1024))
    return cap, soft


def _vmem_limit(est_bytes, soft_cap):
    return int(min(soft_cap, max(32 * 1024 * 1024, 2 * est_bytes + 8 * 1024 * 1024)))


def _bilinear_matrix(out_size, in_size):
    """1-D interpolation operator matching F.interpolate(mode='bilinear', align_corners=True)."""
    if out_size == 1 or in_size == 1:
        src = jnp.zeros((out_size,), jnp.float32)
    else:
        src = jnp.arange(out_size, dtype=jnp.float32) * (in_size - 1) / (out_size - 1)
    lo = jnp.clip(jnp.floor(src).astype(jnp.int32), 0, in_size - 1)
    hi = jnp.clip(lo + 1, 0, in_size - 1)
    frac = src - lo.astype(jnp.float32)
    rows = jnp.arange(out_size)
    u = jnp.zeros((out_size, in_size), jnp.float32)
    u = u.at[rows, lo].add(1.0 - frac)
    u = u.at[rows, hi].add(frac)
    return u


def _stage2_tiles(out_dim, h_out, w_out, hp, wp, budget):
    """Budget-driven (TOc, TH) so the double-buffered output block + temporaries fit VMEM."""
    th_cands = [d for d in range(min(h_out, 256), 0, -1)
                if h_out % d == 0 and (d % 8 == 0 or d == h_out)]
    th = th_cands[0] if th_cands else h_out

    def est(toc):
        return (2 * toc * th * w_out * 4      # double-buffered f32 output block
                + 2 * toc * hp * wp * 2       # double-buffered bf16 ctx block
                + toc * th * hp * 2           # broadcast Uh (bf16)
                + toc * th * wp * 6           # height-pass result (f32) + bf16 copy
                + toc * th * w_out * 4        # width-pass result before store
                + th * hp * 2 + wp * w_out * 2 + toc * 4
                + 64 * 1024)

    toc_cands = [d for d in range(min(out_dim, 256), 0, -1)
                 if out_dim % d == 0 and (d % 8 == 0 or d == out_dim)]
    if not toc_cands:
        toc_cands = [out_dim]
    toc = toc_cands[-1]
    for d in toc_cands:
        if est(d) <= budget:
            toc = d
            break
    return toc, th, est(toc)


# ----------------------------------------------------------------------------- stage 0 kernel
# Hoisted key/query & value projections: streams the pooled activation once per batch and
# writes f = leaky_relu(Wk' x + b') (already carrying BN scale and key_dim**-0.25) and
# v = Wv x + bv, both bf16, tokens on the lane axis.

def _project_kernel(x_ref, wk_ref, kb_ref, wv_ref, bv_ref, f_ref, v_ref, *, slope):
    x = x_ref[0]                                                           # (Cin, Tn) bf16
    f = jnp.dot(wk_ref[...], x, preferred_element_type=jnp.float32) + kb_ref[...]
    f = jnp.where(f >= 0.0, f, slope * f)                                  # folded BN + leaky
    f_ref[0] = f.astype(f_ref.dtype)
    v = jnp.dot(wv_ref[...], x, preferred_element_type=jnp.float32) + bv_ref[...]
    v_ref[0] = v.astype(v_ref.dtype)


# ----------------------------------------------------------------------------- stage 1 kernel
# Flash-style self-attention at pooled resolution over precomputed bf16 features.
#   fq : (Kd, Tq) resident query block     fk/vk : (Kd/Vd, Tk) streamed key/value blocks
#   o  : (Od, Tq) = folded(weights-conv, refine-conv, refine-BN-scale) @ softmax(QK^T) V

def _flash_attention_kernel(fq_ref, fk_ref, vk_ref, wc_ref, bc_ref, o_ref,
                            m_sc, l_sc, acc_sc, *, n_valid, block_k, mask_padded):
    k = pl.program_id(2)
    f32 = jnp.float32
    bf16 = jnp.bfloat16

    @pl.when(k == 0)
    def _():
        m_sc[...] = jnp.full(m_sc.shape, -jnp.inf, dtype=f32)
        l_sc[...] = jnp.zeros(l_sc.shape, dtype=f32)
        acc_sc[...] = jnp.zeros(acc_sc.shape, dtype=f32)

    fq = fq_ref[0]                                                         # (Kd, Tq) bf16
    fk = fk_ref[0]                                                         # (Kd, Tk) bf16
    vk = vk_ref[0]                                                         # (Vd, Tk) bf16

    # sim[key, query]; the key_dim**-0.5 temperature is already folded into f (x2 * 0.25 pow).
    sim = lax.dot_general(fk, fq, (((0,), (0,)), ((), ())),
                          preferred_element_type=f32)                      # (Tk, Tq)
    if mask_padded:  # static: only emitted when N was padded up to a multiple of 128
        key_id = k * block_k + lax.broadcasted_iota(jnp.int32, (block_k, 1), 0)
        sim = jnp.where(key_id < n_valid, sim, -jnp.inf)

    # online softmax over key blocks (all elementwise math in f32: v5e-friendly)
    m_prev = m_sc[...]                                                     # (1, Tq)
    m_new = jnp.maximum(m_prev, jnp.max(sim, axis=0, keepdims=True))
    alpha = jnp.exp(m_prev - m_new)
    p = jnp.exp(sim - m_new)                                               # (Tk, Tq)
    l_sc[...] = alpha * l_sc[...] + jnp.sum(p, axis=0, keepdims=True)
    acc_sc[...] = alpha * acc_sc[...] + jnp.dot(vk, p.astype(bf16),
                                                preferred_element_type=f32)  # (Vd, Tq)
    m_sc[...] = m_new

    @pl.when(k == pl.num_programs(2) - 1)
    def _():
        inv_l = pl.reciprocal(l_sc[...], approx=False)
        ctx = acc_sc[...] * inv_l                                          # (Vd, Tq)
        o_ref[0] = (jnp.dot(wc_ref[...], ctx.astype(bf16),
                            preferred_element_type=f32) + bc_ref[...]).astype(o_ref.dtype)


# ----------------------------------------------------------------------------- stage 2 kernel
# Separable bilinear upsample (align_corners=True) + refine-BN shift + leaky_relu.
#   ctx : (TOc, hp, wp) pooled-resolution context (already channel-mixed in stage 1), bf16
#   out : (TOc, TH, W) block of the NCHW output, f32

def _upsample_refine_kernel(ctx_ref, uh_ref, uwt_ref, rshift_ref, o_ref, *, slope):
    ctx = ctx_ref[0]                                                       # (TOc, hp, wp) bf16
    toc, hp, wp = ctx.shape
    th = uh_ref.shape[0]
    w_out = uwt_ref.shape[1]

    # height pass: contraction over hp, batched over the channel block (keeps the result
    # channel-major so the NCHW store needs no in-kernel transpose).
    uh = jnp.broadcast_to(uh_ref[...], (toc, th, hp))                      # bf16
    t = jnp.einsum('oha,oab->ohb', uh, ctx,
                   preferred_element_type=jnp.float32)                     # (TOc, TH, wp)

    # width pass: one flattened lane-dense 2-D dot, (TOc*TH, wp) @ (wp, W)
    y = jnp.dot(t.reshape(toc * th, wp).astype(jnp.bfloat16), uwt_ref[...],
                preferred_element_type=jnp.float32)                        # (TOc*TH, W)
    y = y.reshape(toc, th, w_out) + rshift_ref[...]                        # refine-BN shift
    o_ref[0] = jnp.where(y >= 0.0, y, slope * y)                           # leaky_relu


# ----------------------------------------------------------------------------- wrapper

def self_attention_forward(x, wk, k_gamma, k_beta, wv, bv, ww, bw,
                           wr, r_gamma, r_beta, *,
                           key_dim, value_dim, out_dim, scale=2, bn_eps=1e-5):
    """x: NCHW float32. Weights in PyTorch (out_ch, in_ch) layout. Returns NCHW (B,out_dim,H,W)."""
    B, Cin, H, W = x.shape
    x = x.astype(jnp.float32)

    # MaxPool2d(scale, scale) — tiny XLA reduction preamble (keeps NCHW, no transposes).
    if scale > 1:
        hp, wp = H // scale, W // scale
        xc = x[:, :, :hp * scale, :wp * scale]
        xp = xc.reshape(B, Cin, hp, scale, wp, scale).max(axis=(3, 5))
    else:
        hp, wp = H, W
        xp = x
    N = hp * wp

    _, soft_cap = _vmem_caps()
    big_vmem = soft_cap >= 96 * 1024 * 1024

    # ---- token tiling: pad N to a multiple of 128; never fall back to a full (N,N) tile ----
    t_cands = (1024, 896, 768, 640, 512, 384, 256, 128) if big_vmem else (512, 384, 256, 128)
    N_pad = _round_up(N, 128)
    Tq = _largest_divisor(N_pad, t_cands)
    Tk = Tq
    n_q, n_k = N_pad // Tq, N_pad // Tk

    # pooled activation: bf16, zero-padded tokens (padded keys are masked in the flash kernel)
    xp_flat = xp.reshape(B, Cin, N).astype(jnp.bfloat16)
    if N_pad != N:
        xp_flat = jnp.pad(xp_flat, ((0, 0), (0, 0), (0, N_pad - N)))

    # ---- parameter folding (all exact re-associations of the PyTorch op order) -------------
    # InPlaceABNSync modelled as eval-mode BN (running_mean=0, running_var=1) + leaky_relu.
    # key_dim**-0.25 is folded into BOTH query and key features (leaky_relu is positively
    # homogeneous), which implements the key_dim**-0.5 softmax temperature with zero per-step
    # work in the flash loop.
    qk_scale = float(key_dim) ** -0.25
    k_bn_scale = (k_gamma / jnp.sqrt(1.0 + bn_eps)).astype(jnp.float32)
    wk_f = (qk_scale * k_bn_scale[:, None] * wk).astype(jnp.bfloat16)      # (Kd, Cin)
    kb = (qk_scale * k_beta).astype(jnp.float32).reshape(key_dim, 1)       # (Kd, 1)
    wv_b = wv.astype(jnp.bfloat16)                                         # (Vd, Cin)
    bv_c = bv.astype(jnp.float32).reshape(value_dim, 1)                    # (Vd, 1)

    r_scale = (r_gamma / jnp.sqrt(1.0 + bn_eps)).astype(jnp.float32).reshape(out_dim, 1)
    r_shift = r_beta.astype(jnp.float32).reshape(out_dim, 1, 1)
    # 'weights' conv + refine conv + refine-BN scale commute with the bilinear upsample.
    wc = (r_scale * (wr @ ww)).astype(jnp.bfloat16)                        # (Od, Vd)
    bc = (r_scale * (wr @ bw.reshape(out_dim, 1))).astype(jnp.float32)     # (Od, 1)

    # ---- stage 0: hoisted projections (f, v) computed once per batch ------------------------
    est0 = (2 * 2 * Cin * Tq
            + 2 * 2 * (key_dim + value_dim) * Tq
            + (key_dim + value_dim) * Cin * 2 + (key_dim + value_dim) * 4
            + 2 * (key_dim + value_dim) * Tq * 4
            + 64 * 1024)
    f_feat, v_feat = pl.pallas_call(
        functools.partial(_project_kernel, slope=0.01),
        out_shape=(jax.ShapeDtypeStruct((B, key_dim, N_pad), jnp.bfloat16),
                   jax.ShapeDtypeStruct((B, value_dim, N_pad), jnp.bfloat16)),
        grid=(B, n_q),
        in_specs=[
            pl.BlockSpec((1, Cin, Tq), lambda b, t: (b, 0, t)),            # pooled activation
            pl.BlockSpec((key_dim, Cin), lambda b, t: (0, 0)),             # folded key/query W
            pl.BlockSpec((key_dim, 1), lambda b, t: (0, 0)),               # folded key shift
            pl.BlockSpec((value_dim, Cin), lambda b, t: (0, 0)),           # value conv W
            pl.BlockSpec((value_dim, 1), lambda b, t: (0, 0)),             # value conv bias
        ],
        out_specs=(pl.BlockSpec((1, key_dim, Tq), lambda b, t: (b, 0, t)),
                   pl.BlockSpec((1, value_dim, Tq), lambda b, t: (b, 0, t))),
        compiler_params=pltpu.CompilerParams(
            dimension_semantics=("parallel", "parallel"),
            vmem_limit_bytes=_vmem_limit(est0, soft_cap)),
    )(xp_flat, wk_f, kb, wv_b, bv_c)

    # ---- stage 1: flash attention over precomputed bf16 features ----------------------------
    est1 = (2 * 2 * key_dim * (Tq + Tk)
            + 2 * 2 * value_dim * Tk
            + 2 * 2 * out_dim * Tq
            + out_dim * value_dim * 2 + out_dim * 4
            + (value_dim * Tq + 2 * Tq) * 4
            + 6 * Tk * Tq * 4
            + 64 * 1024)
    ctxw = pl.pallas_call(
        functools.partial(_flash_attention_kernel,
                          n_valid=N, block_k=Tk, mask_padded=(N_pad != N)),
        out_shape=jax.ShapeDtypeStruct((B, out_dim, N_pad), jnp.bfloat16),
        grid=(B, n_q, n_k),
        in_specs=[
            pl.BlockSpec((1, key_dim, Tq), lambda b, q, k: (b, 0, q)),     # query features (resident)
            pl.BlockSpec((1, key_dim, Tk), lambda b, q, k: (b, 0, k)),     # key features (streamed)
            pl.BlockSpec((1, value_dim, Tk), lambda b, q, k: (b, 0, k)),   # value features (streamed)
            pl.BlockSpec((out_dim, value_dim), lambda b, q, k: (0, 0)),    # folded weights+refine
            pl.BlockSpec((out_dim, 1), lambda b, q, k: (0, 0)),            # folded bias
        ],
        out_specs=pl.BlockSpec((1, out_dim, Tq), lambda b, q, k: (b, 0, q)),
        scratch_shapes=[
            pltpu.VMEM((1, Tq), jnp.float32),                              # running max
            pltpu.VMEM((1, Tq), jnp.float32),                              # running sum
            pltpu.VMEM((value_dim, Tq), jnp.float32),                      # context accumulator
        ],
        compiler_params=pltpu.CompilerParams(
            dimension_semantics=("parallel", "parallel", "arbitrary"),
            vmem_limit_bytes=_vmem_limit(est1, soft_cap)),
    )(f_feat, f_feat, v_feat, wc, bc)

    # ---- stage 2: separable bilinear upsample + refine shift + leaky_relu -------------------
    ctx4 = ctxw[:, :, :N].reshape(B, out_dim, hp, wp)                      # drop padded tokens
    Uh = _bilinear_matrix(H, hp).astype(jnp.bfloat16)                      # (H, hp)
    UwT = _bilinear_matrix(W, wp).T.astype(jnp.bfloat16)                   # (wp, W)

    TOc, TH, est2 = _stage2_tiles(out_dim, H, W, hp, wp, budget=soft_cap // 2)

    out = pl.pallas_call(
        functools.partial(_upsample_refine_kernel, slope=0.01),
        out_shape=jax.ShapeDtypeStruct((B, out_dim, H, W), jnp.float32),
        grid=(B, out_dim // TOc, H // TH),
        in_specs=[
            pl.BlockSpec((1, TOc, hp, wp), lambda b, c, h: (b, c, 0, 0)),  # pooled context
            pl.BlockSpec((TH, hp), lambda b, c, h: (h, 0)),                # Uh row block
            pl.BlockSpec((wp, W), lambda b, c, h: (0, 0)),                 # Uw^T
            pl.BlockSpec((TOc, 1, 1), lambda b, c, h: (c, 0, 0)),          # refine-BN shift
        ],
        out_specs=pl.BlockSpec((1, TOc, TH, W), lambda b, c, h: (b, c, h, 0)),
        compiler_params=pltpu.CompilerParams(
            dimension_semantics=("parallel", "parallel", "parallel"),
            vmem_limit_bytes=_vmem_limit(est2, soft_cap)),
    )(ctx4, Uh, UwT, r_shift)

    return out                                                             # NCHW, no transpose


# ----------------------------------------------------------------------------- pure-JAX reference

def _reference_forward(x, wk, k_gamma, k_beta, wv, bv, ww, bw, wr, r_gamma, r_beta,
                       *, key_dim, value_dim, out_dim, scale=2, bn_eps=1e-5):
    B, Cin, H, W = x.shape
    if scale > 1:
        hp, wp = H // scale, W // scale
        xp = x[:, :, :hp * scale, :wp * scale].reshape(B, Cin, hp, scale, wp, scale).max(axis=(3, 5))
    else:
        hp, wp = H, W
        xp = x
    N = hp * wp
    xf = xp.reshape(B, Cin, N)

    def bn_lrelu(z, g, bta):
        z = z * (g / jnp.sqrt(1.0 + bn_eps))[None, :, None] + bta[None, :, None]
        return jnp.where(z >= 0.0, z, 0.01 * z)

    f = bn_lrelu(jnp.einsum('kc,bcn->bkn', wk, xf), k_gamma, k_beta)          # (B,Kd,N)
    v = jnp.einsum('vc,bcn->bvn', wv, xf) + bv[None, :, None]                 # (B,Vd,N)
    sim = jnp.einsum('bkq,bkn->bqn', f, f) * (key_dim ** -0.5)                # (B,Nq,Nk)
    p = jax.nn.softmax(sim, axis=-1)
    ctx = jnp.einsum('bqn,bvn->bvq', p, v)                                    # (B,Vd,N)
    cw = jnp.einsum('ov,bvq->boq', ww, ctx) + bw[None, :, None]               # (B,Od,N)
    cw = cw.reshape(B, out_dim, hp, wp)
    Uh = _bilinear_matrix(H, hp)
    Uw = _bilinear_matrix(W, wp)
    up = jnp.einsum('ya,xc,boac->boyx', Uh, Uw, cw)                           # (B,Od,H,W)
    y = jnp.einsum('oc,bchw->bohw', wr, up)
    y = y * (r_gamma / jnp.sqrt(1.0 + bn_eps))[None, :, None, None] + r_beta[None, :, None, None]
    return jnp.where(y >= 0.0, y, 0.01 * y)


# ----------------------------------------------------------------------------- demo / self-check

if __name__ == "__main__":
    # Module config. NOTE: the PyTorch module applies `refine` (Conv2d(in_dim, out_dim)) to a
    # tensor with out_dim channels, so it only runs when in_dim == out_dim.
    B, in_dim, out_dim, key_dim, value_dim, scale = 2, 8, 8, 4, 8, 2
    H = W = 16

    key = jax.random.PRNGKey(0)
    ks = jax.random.split(key, 10)
    x = jax.random.normal(ks[0], (B, in_dim, H, W), jnp.float32)

    # Conv weights in PyTorch (out_ch, in_ch) layout.
    wk = 0.3 * jax.random.normal(ks[1], (key_dim, in_dim), jnp.float32)
    gamma_k = 1.0 + 0.1 * jax.random.normal(ks[2], (key_dim,), jnp.float32)
    beta_k = 0.1 * jax.random.normal(ks[3], (key_dim,), jnp.float32)
    wv = 0.3 * jax.random.normal(ks[4], (value_dim, in_dim), jnp.float32)
    bv = 0.1 * jax.random.normal(ks[5], (value_dim,), jnp.float32)
    # NOTE: PyTorch __init__ zero-inits the 'weights' conv; small nonzero values are used so
    # the attention hot path is actually exercised.
    ww = 0.3 * jax.random.normal(ks[6], (out_dim, value_dim), jnp.float32)
    bw = 0.1 * jax.random.normal(ks[7], (out_dim,), jnp.float32)
    wr = 0.3 * jax.random.normal(ks[8], (out_dim, out_dim), jnp.float32)
    gamma_r = 1.0 + 0.1 * jax.random.normal(ks[9], (out_dim,), jnp.float32)
    beta_r = jnp.zeros((out_dim,), jnp.float32)

    y = self_attention_forward(
        x, wk, gamma_k, beta_k, wv, bv, ww, bw, wr, gamma_r, beta_r,
        key_dim=key_dim, value_dim=value_dim, out_dim=out_dim, scale=scale)
    y = jax.block_until_ready(y)

    assert y.shape == (B, out_dim, H, W), y.shape
    assert bool(jnp.all(jnp.isfinite(y)))

    # Pure-f32 reference check (kernel uses bf16 features/intermediates with f32 accumulation).
    y_ref = _reference_forward(
        x, wk, gamma_k, beta_k, wv, bv, ww, bw, wr, gamma_r, beta_r,
        key_dim=key_dim, value_dim=value_dim, out_dim=out_dim, scale=scale)
    max_err = float(jnp.max(jnp.abs(y - y_ref)))
    assert bool(jnp.allclose(y, y_ref, atol=1e-1, rtol=1e-1)), f"max abs err {max_err}"

    print("KERNEL_OK")
</pallas_src>

<mosaic_0001>
module attributes {stable_mosaic.version = 11 : i64} {
  func.func @_project_kernel(%arg0: i32, %arg1: i32, %arg2: memref<1x8x128xbf16, #tpu.memory_space<vmem>>, %arg3: memref<4x8xbf16, #tpu.memory_space<vmem>>, %arg4: memref<4x1xf32, #tpu.memory_space<vmem>>, %arg5: memref<8x8xbf16, #tpu.memory_space<vmem>>, %arg6: memref<8x1xf32, #tpu.memory_space<vmem>>, %arg7: memref<1x4x128xbf16, #tpu.memory_space<vmem>>, %arg8: memref<1x8x128xbf16, #tpu.memory_space<vmem>>) attributes {dimension_semantics = [#tpu.dimension_semantics<parallel>, #tpu.dimension_semantics<parallel>], iteration_bounds = array<i64: 2, 1>, scalar_prefetch = 0 : i64, scratch_operands = 0 : i64, tpu.core_type = #tpu.core_type<tc>, window_params = [{transform_indices = @transform_0, window_bounds = array<i64: 1, 8, 128>}, {pipeline_mode = #tpu.pipeline_mode<synchronous>, transform_indices = @transform_1, window_bounds = array<i64: 4, 8>}, {pipeline_mode = #tpu.pipeline_mode<synchronous>, transform_indices = @transform_2, window_bounds = array<i64: 4, 1>}, {pipeline_mode = #tpu.pipeline_mode<synchronous>, transform_indices = @transform_3, window_bounds = array<i64: 8, 8>}, {pipeline_mode = #tpu.pipeline_mode<synchronous>, transform_indices = @transform_4, window_bounds = array<i64: 8, 1>}, {transform_indices = @transform_5, window_bounds = array<i64: 1, 4, 128>}, {transform_indices = @transform_6, window_bounds = array<i64: 1, 8, 128>}]} {
    %c0 = arith.constant 0 : index
    %c0_0 = arith.constant 0 : index
    %c0_1 = arith.constant 0 : index
    %0 = vector.load %arg2[%c0, %c0_0, %c0_1] : memref<1x8x128xbf16, #tpu.memory_space<vmem>>, vector<1x8x128xbf16>
    %1 = vector.shape_cast %0 : vector<1x8x128xbf16> to vector<8x128xbf16>
    %c0_2 = arith.constant 0 : index
    %c0_3 = arith.constant 0 : index
    %2 = vector.load %arg3[%c0_2, %c0_3] : memref<4x8xbf16, #tpu.memory_space<vmem>>, vector<4x8xbf16>
    %cst = arith.constant dense<0.000000e+00> : vector<4x128xf32>
    %3 = tpu.matmul %2, %1, %cst {dimension_numbers = #tpu.dot_dimension_numbers<[1], [0], [0], [1], [0, 0, 1, 1], [], []>} : vector<4x8xbf16>, vector<8x128xbf16>, vector<4x128xf32> -> vector<4x128xf32>
    %c0_4 = arith.constant 0 : index
    %c0_5 = arith.constant 0 : index
    %4 = vector.load %arg4[%c0_4, %c0_5] : memref<4x1xf32, #tpu.memory_space<vmem>>, vector<4x1xf32>
    %5 = vector.broadcast %4 : vector<4x1xf32> to vector<4x128xf32>
    %6 = arith.addf %3, %5 : vector<4x128xf32>
    %cst_6 = arith.constant 0.000000e+00 : f32
    %7 = vector.broadcast %cst_6 : f32 to vector<4x128xf32>
    %8 = arith.cmpf oge, %6, %7 : vector<4x128xf32>
    %cst_7 = arith.constant 0.00999999977 : f32
    %9 = vector.broadcast %cst_7 : f32 to vector<4x128xf32>
    %10 = arith.mulf %9, %6 : vector<4x128xf32>
    %11 = arith.select %8, %6, %10 : vector<4x128xi1>, vector<4x128xf32>
    %12 = arith.truncf %11 : vector<4x128xf32> to vector<4x128xbf16>
    %c0_8 = arith.constant 0 : index
    %c0_9 = arith.constant 0 : index
    %c0_10 = arith.constant 0 : index
    %13 = vector.load %arg7[%c0_8, %c0_9, %c0_10] : memref<1x4x128xbf16, #tpu.memory_space<vmem>>, vector<1x4x128xbf16>
    %14 = vector.shape_cast %13 : vector<1x4x128xbf16> to vector<4x128xbf16>
    %15 = vector.shape_cast %12 : vector<4x128xbf16> to vector<1x4x128xbf16>
    tpu.vector_store %arg7[%c0_8, %c0_9, %c0_10], %15 {strides = array<i32>} : memref<1x4x128xbf16, #tpu.memory_space<vmem>>, vector<1x4x128xbf16>,
    %c0_11 = arith.constant 0 : index
    %c0_12 = arith.constant 0 : index
    %16 = vector.load %arg5[%c0_11, %c0_12] : memref<8x8xbf16, #tpu.memory_space<vmem>>, vector<8x8xbf16>
    %cst_13 = arith.constant dense<0.000000e+00> : vector<8x128xf32>
    %17 = tpu.matmul %16, %1, %cst_13 {dimension_numbers = #tpu.dot_dimension_numbers<[1], [0], [0], [1], [0, 0, 1, 1], [], []>} : vector<8x8xbf16>, vector<8x128xbf16>, vector<8x128xf32> -> vector<8x128xf32>
    %c0_14 = arith.constant 0 : index
    %c0_15 = arith.constant 0 : index
    %18 = vector.load %arg6[%c0_14, %c0_15] : memref<8x1xf32, #tpu.memory_space<vmem>>, vector<8x1xf32>
    %19 = vector.broadcast %18 : vector<8x1xf32> to vector<8x128xf32>
    %20 = arith.addf %17, %19 : vector<8x128xf32>
    %21 = arith.truncf %20 : vector<8x128xf32> to vector<8x128xbf16>
    %c0_16 = arith.constant 0 : index
    %c0_17 = arith.constant 0 : index
    %c0_18 = arith.constant 0 : index
    %22 = vector.load %arg8[%c0_16, %c0_17, %c0_18] : memref<1x8x128xbf16, #tpu.memory_space<vmem>>, vector<1x8x128xbf16>
    %23 = vector.shape_cast %22 : vector<1x8x128xbf16> to vector<8x128xbf16>
    %24 = vector.shape_cast %21 : vector<8x128xbf16> to vector<1x8x128xbf16>
    tpu.vector_store %arg8[%c0_16, %c0_17, %c0_18], %24 {strides = array<i32>} : memref<1x8x128xbf16, #tpu.memory_space<vmem>>, vector<1x8x128xbf16>,
    return
  }
  func.func @transform_0(%arg0: i32, %arg1: i32) -> (i32, i32, i32) {
    %c0_i32 = arith.constant 0 : i32
    %c0_i32_0 = arith.constant 0 : i32
    return %arg0, %c0_i32, %arg1 : i32, i32, i32
  }
  func.func @transform_1(%arg0: i32, %arg1: i32) -> (i32, i32) {
    %c0_i32 = arith.constant 0 : i32
    %c0_i32_0 = arith.constant 0 : i32
    %c0_i32_1 = arith.constant 0 : i32
    return %c0_i32, %c0_i32_0 : i32, i32
  }
  func.func @transform_2(%arg0: i32, %arg1: i32) -> (i32, i32) {
    %c0_i32 = arith.constant 0 : i32
    %c0_i32_0 = arith.constant 0 : i32
    %c0_i32_1 = arith.constant 0 : i32
    return %c0_i32, %c0_i32_0 : i32, i32
  }
  func.func @transform_3(%arg0: i32, %arg1: i32) -> (i32, i32) {
    %c0_i32 = arith.constant 0 : i32
    %c0_i32_0 = arith.constant 0 : i32
    %c0_i32_1 = arith.constant 0 : i32
    return %c0_i32, %c0_i32_0 : i32, i32
  }
  func.func @transform_4(%arg0: i32, %arg1: i32) -> (i32, i32) {
    %c0_i32 = arith.constant 0 : i32
    %c0_i32_0 = arith.constant 0 : i32
    %c0_i32_1 = arith.constant 0 : i32
    return %c0_i32, %c0_i32_0 : i32, i32
  }
  func.func @transform_5(%arg0: i32, %arg1: i32) -> (i32, i32, i32) {
    %c0_i32 = arith.constant 0 : i32
    %c0_i32_0 = arith.constant 0 : i32
    return %arg0, %c0_i32, %arg1 : i32, i32, i32
  }
  func.func @transform_6(%arg0: i32, %arg1: i32) -> (i32, i32, i32) {
    %c0_i32 = arith.constant 0 : i32
    %c0_i32_0 = arith.constant 0 : i32
    return %arg0, %c0_i32, %arg1 : i32, i32, i32
  }
}

</mosaic_0001>

<bundles_post_ra>
// kernel: tpu_custom_call.1
= control target key start
LH: loop header
LB: loop body
LE: loop exit
PB: predicated region body
PF: predicated region fallthrough
CT: control target
= control target key end

     0   :  { %12 = vsyncpa [#allocation3], 0  ;;  %s948_s0 = inlined_call_operand.vmem [shape: bf16[2,8,128], index: 0, kind: input, shape index: {}]   ;;  %s949_s1 = inlined_call_operand.vmem [shape: bf16[4,8], index: 1, kind: input, shape index: {}]   ;;  %s950_s2 = inlined_call_operand.vmem [shape: f32[4,1], index: 2, kind: input, shape index: {}]   ;;  %s951_s3 = inlined_call_operand.vmem [shape: bf16[8,8], index: 3, kind: input, shape index: {}]   ;;  %s952_s4 = inlined_call_operand.vmem [shape: f32[8,1], index: 4, kind: input, shape index: {}]   ;;  %s953_s5 = inlined_call_operand.hbm [shape: bf16[2,4,128], index: 5, kind: output, shape index: {0}]   ;;  %s954_s6 = inlined_call_operand.hbm [shape: bf16[2,8,128], index: 6, kind: output, shape index: {1}]  }
   0x1   :  { %14 = vsyncpa [#allocation3 + $0x1], 0 }
   0x2   :  { %15 = vsyncpa [#allocation5], 0 }
   0x3   :  { %17 = vsyncpa [#allocation5 + $0x1], 0  ;;  %s785_s21 = smov 0   ;;  %s787_s22 = smov 0  }
   0x4   :  { %s789_s23 = smov 0   ;;  %s791_s24 = smov 0  }
   0x5   :  { %s793_s25 = smov 0   ;;  %s795_s26 = smov 0  }
   0x6 LB: > { %s537_s27 = sadd.s32 4294967295, %s743_s26   ;;  %s538_s28 = sadd.s32 4294967294, %s743_s26   ;;  %s743_s26 = sphi %s795_s26, %s23_s26   ;;  %s739_s25 = sphi %s793_s25, %s961_s25   ;;  %s735_s24 = sphi %s791_s24, %s960_s24   ;;  %s731_s23 = sphi %s789_s23, %s959_s23   ;;  %s727_s22 = sphi %s787_s22, %s958_s22   ;;  %s723_s21 = sphi %s785_s21, %s957_s21  }
   0x7   : > { %s35_s29 = sadd.s32 1, %s739_s25  ;;  %s156_s30 = sadd.s32 1, %s731_s23 }
   0x8   : > { %p37_p0 = scmp.ge.s32.totalorder %s35_s29, 2  ;;  %p166_p1 = scmp.ne.s32.totalorder %s731_s23, %s727_s22 }
   0x9   : > { %p167_p2 = scmp.eq.s32.totalorder %s537_s27, 1  ;;  %p172_p3 = scmp.ne.s32.totalorder %s727_s22, %s723_s21 }
   0xa   : > { %s963_s29 = smov (%p37_p0, %s35_s29), 0  ;;  %p173_p5 = scmp.eq.s32.totalorder %s538_s28, 1 }
   0xb   : > { %p825_p4 = por %p167_p2, %p166_p1  ;;  %s151_s8 = ssub.s32 %s739_s25, %s963_s29 }
   0xc   : > { %p541_p6 = scmp.ge.s32.totalorder %s743_s26, 1  ;;  %p154_p7 = scmp.eq.s32.totalorder %s151_s8, 0 }
   0xd   : > { %p832_p8 = por %p173_p5, %p172_p3  ;;  %p241_p9 = scmp.lt.s32.totalorder %s743_s26, 3 }
   0xe   : > { %s838_s10 = scalar_select %p154_p7, %s731_s23, %s156_s30  }
   0xf   : > { %p242_p10 = pnand %p541_p6, %p241_p9 }
  0x10   : > { %p278_p11 = scmp.lt.s32.totalorder (!%p242_p10), %s735_s24, 1  ;;  %v745_v0 = vmov (!%p242_p10), 0.0   ;;  %v288_v1 = vld [vmem:[%s950_s2] sm:$0xf] (!%p242_p10)  ;;  %vm746_vm0 = vmmov (!%p242_p10), 0   ;;  %v747_v2 = vmov (!%p242_p10), 0  }
  0x11   : > { %245 = sbr.rel (%p242_p10) target bundleno = 287 (0x11f), region = 40  ;;  %557 = vmatprep.subr.bf16.mxu0 (!%p242_p10), %v745_v0  ;;  %563 = vmatprep.subr.bf16.mxu1 (!%p242_p10), %v745_v0  ;;  %vm298_vm1 = vcmask (!%p242_p10), 1043456   ;;  %v348_v4 = vld [vmem:[%s952_s4] sm:$0xff] (!%p242_p10)  ;;  %vm294_vm2 = vcmask (!%p242_p10), 64512   ;;  %s858_s8 = sand.u32 (!%p242_p10), 1, %s727_s22  }
  0x12   : > { %559 = vmatprep.mubr.msk.bf16.mxu0 (!%p242_p10), %vm746_vm0, %v745_v0  ;;  %565 = vmatprep.mubr.msk.bf16.mxu1 (!%p242_p10), %vm746_vm0, %v745_v0  ;;  %v287_v6 = vld [vmem:[%s949_s1] sm:$0x3] (!%p242_p10)  ;;  %s543_s11 = sshll.u32 (!%p242_p10), %s858_s8, 2  ;;  %s542_s12 = sshll.u32 (!%p242_p10), %s858_s8, 1 }
  0x13   : > { %632 = vset.pattern.permute.xlu0 (!%p242_p10), %v747_v2  ;;  %v347_v7 = vld [vmem:[%s951_s3] sm:$0xf] (!%p242_p10)  ;;  %s549_s16 = sshll.u32 (!%p242_p10), %s735_s24, 5 }
  0x14   : > { %291 = vperm.xlu0 (!%p242_p10), %632, %v288_v1   ;;  %s877_s30 = scalar_lea.hbm (!%p242_p10), %s953_s5, %s549_s16 }
  0x18   : > { %s279_s13 = scalar_select %p278_p11, %s735_s24, 1  ;;  %351 = vperm.xlu0 %632, %v348_v4  }
  0x1a   : > { %s544_s14 = sshll.u32 %s279_s13, 2  ;;  %s550_s13 = sshll.u32 %s735_s24, 6 }
  0x1b   : > { %s284_s17 = scalar_lea.vmem %s948_s0, %s544_s14  ;;  %s277_s14 = scalar_lea.vmem [#allocation4], %s543_s11 }
  0x1c   : > { %v286_v3 = vld [vmem:[%s284_s17] sm:$0xf]  ;;  %s433_s15 = sshll.u32 %s277_s14, 4  ;;  %s864_s17 = scalar_lea.vmem [#allocation2], %s542_s12  ;;  %s872_s15 = int_to_ptr.vmem [resolvable:$true] %s433_s15 }
  0x1d   : > { %v300_v5 = vsel %vm298_vm1, %v286_v3, 0  ;;  %s419_s18 = sshll.u32 %s864_s17, 4  ;;  %s870_s27 = scalar_lea.hbm %s954_s6, %s550_s13  ;;  %s879_s18 = int_to_ptr.vmem [resolvable:$true] %s419_s18 }
  0x1e   : > { %558 = vmatpush3.bf16.msra.mxu0 %v300_v5  ;;  %564 = vmatpush3.bf16.msra.mxu1 %v300_v5  ;;  %s405_s11 = scalar_lea.sflag [#allocation5], %s858_s8  ;;  %s633_s12 = scalar_lea.vmem %s872_s15, 64 }
  0x1f   : > { %p634_p12 = scmp.ne.s32.totalorder %s872_s15, %s633_s12  ;;  %s748_s13 = smov [#allocation4]  }
  0x20   : > { %s637_s19 = sshll.u32 %s748_s13, 4  ;;  %s638_s19 = int_to_ptr.vmem [resolvable:$false] %s637_s19 }
  0x21   : > { %560 = vmatmul.mubr.msk.bf16.vlgmr.msra.gmra.mrb[0].mxu0 %vm294_vm2, %v287_v6  ;;  %566 = vmatmul.mubr.msk.bf16.vlgmr.msra.gmra.mrb[0].mxu1 %vm294_vm2, %v347_v7  ;;  %p635_p13 = pnand %p634_p12, %p825_p4  ;;  %s639_s20 = scalar_lea.vmem %s638_s19, 128 }
  0x22   : > { %p640_p1 = scmp.lt.s32.totalorder %s872_s15, %s638_s19  ;;  %p641_p2 = scmp.lt.s32.totalorder %s639_s20, %s633_s12 }
  0x23   : > { %p636_p0 = pneg %p635_p13 }
  0x24   : > { %p642_p3 = por %p641_p2, %p640_p1 }
  0x26   : > { %p643_p5 = pnand %p642_p3, %p636_p0 }
  0x93   : > { %v292_v8 = vpop.permute.xlu0 %291 }
  0x97   : > { %v352_v9 = vpop.permute.xlu0 %351 }
  0xf4   : > { %v336_v10 = vpop.f32.mrb[0].mxu0  ;;  %v391_v11 = vpop.f32.mrb[0].mxu1 }
  0xf5   : > { %v337_v12 = vadd.f32 %v336_v10, %v292_v8  ;;  %v392_v13 = vadd.f32 %v391_v11, %v352_v9  ;;  %v561_v14 = vpop.f32.mrb[1].mxu0  ;;  %v567_v15 = vpop.f32.mrb[1].mxu1 }
  0xf6   : > { %v339_v16 = vpop.f32.mrb[2].mxu0  ;;  %v394_v17 = vpop.f32.mrb[2].mxu1 }
  0xf7   : > { %vm342_vm3 = vcmp.ge.f32.partialorder %v337_v12, 0.0  ;;  %v343_v18 = vmul.f32 0.01, %v337_v12  ;;  %v397_v19 = vpack.c.bf16 %v392_v13, %v392_v13  ;;  %v562_v20 = vpop.f32.mrb[3].mxu0  ;;  %v568_v21 = vpop.f32.mrb[3].mxu1 }
  0xf9   : > { %v344_v22 = vsel %vm342_vm3, %v337_v12, %v343_v18  ;;  %398 = vst [vmem:[%s277_s14] sm:$0xf] %v397_v19 }
  0xfa   : > { %v345_v23 = vpack.c.bf16 %v344_v22, %v344_v22 }
  0xfb   : > { %646 = shalt.err (!%p643_p5)
}
  0xfc   : > { %s647_s14 = scalar_lea.hbm %s870_s27, 64  ;;  %s651_s28 = scalar_lea.hbm %s954_s6, 128 }
  0xfd   : > { %p648_p6 = scmp.ne.s32.totalorder %s870_s27, %s647_s14  ;;  %p652_p10 = scmp.lt.u32.totalorder %s870_s27, %s954_s6 }
  0xfe   : > { %p653_p11 = scmp.lt.u32.totalorder %s651_s28, %s647_s14  ;;  %p655_p13 = scmp.lt.u32.totalorder %s647_s14, %s870_s27 }
  0xff   : > { %p649_p7 = pnand %p648_p6, %p825_p4 }
 0x100   : > { %p654_p12 = por %p653_p11, %p652_p10 }
 0x101   : > { %p650_p9 = pneg %p649_p7 }
 0x102   : > { %p656_p0 = por %p655_p13, %p654_p12 }
 0x104   : > { %p657_p1 = pnand %p656_p0, %p650_p9 }
 0x106   : > { %660 = shalt.err (!%p657_p1)
}
 0x107   : > { %570 = dma.vmem_to_hbm [thread:$0]  (%p825_p4), %s872_s15, 64, %s870_s27, %s405_s11   ;;  %346 = vst [vmem:[%s864_s17] sm:$0x3] %v345_v23 }
 0x108   : > { %s400_s12 = scalar_lea.sflag [#allocation3], %s858_s8  ;;  %s661_s20 = scalar_lea.vmem %s879_s18, 32 }
 0x109   : > { %p662_p2 = scmp.ne.s32.totalorder %s879_s18, %s661_s20  ;;  %s749_s14 = smov [#allocation2]  }
 0x10a   : > { %s665_s16 = sshll.u32 %s749_s14, 4  ;;  %s666_s16 = int_to_ptr.vmem [resolvable:$false] %s665_s16 }
 0x10b   : > { %p663_p3 = pnand %p662_p2, %p825_p4  ;;  %s667_s24 = scalar_lea.vmem %s666_s16, 64 }
 0x10c   : > { %p668_p6 = scmp.lt.s32.totalorder %s879_s18, %s666_s16  ;;  %p669_p7 = scmp.lt.s32.totalorder %s667_s24, %s661_s20 }
 0x10d   : > { %p664_p5 = pneg %p663_p3 }
 0x10e   : > { %p670_p9 = por %p669_p7, %p668_p6 }
 0x110   : > { %p671_p10 = pnand %p670_p9, %p664_p5 }
 0x112   : > { %674 = shalt.err (!%p671_p10)
}
 0x113   : > { %s675_s8 = scalar_lea.hbm %s877_s30, 32  ;;  %s679_s27 = scalar_lea.hbm %s953_s5, 64 }
 0x114   : > { %p676_p11 = scmp.ne.s32.totalorder %s877_s30, %s675_s8  ;;  %p680_p0 = scmp.lt.u32.totalorder %s877_s30, %s953_s5 }
 0x115   : > { %p681_p1 = scmp.lt.u32.totalorder %s679_s27, %s675_s8  ;;  %p683_p3 = scmp.lt.u32.totalorder %s675_s8, %s877_s30 }
 0x116   : > { %p677_p12 = pnand %p676_p11, %p825_p4 }
 0x117   : > { %p682_p2 = por %p681_p1, %p680_p0 }
 0x118   : > { %p678_p13 = pneg %p677_p12 }
 0x119   : > { %p684_p5 = por %p683_p3, %p682_p2 }
 0x11b   : > { %p685_p6 = pnand %p684_p5, %p678_p13 }
 0x11d   : > { %688 = shalt.err (!%p685_p6)
}
 0x11e   : > { %569 = dma.vmem_to_hbm [thread:$0]  (%p825_p4), %s879_s18, 32, %s877_s30, %s400_s12  }
 0x11f PF: > { %p580_p7 = scmp.ge.s32.totalorder %s743_s26, 2  ;;  %s445_s13 = sand.u32 1, %s723_s21  }
 0x120   : > { %s446_s19 = scalar_lea.sflag [#allocation3], %s445_s13 }
 0x121   : > { %p574_p9 = pnand %p580_p7, %p832_p8 }
 0x123   : > { %714 = dma.done.wait (!%p574_p9), %s446_s19, 32  }
 0x124   : > { %716 = vsyncadd (!%p574_p9), %s446_s19, 4294967264  ;;  %s455_s20 = scalar_lea.sflag [#allocation5], %s445_s13 }
 0x125   : > { %718 = dma.done.wait (!%p574_p9), %s455_s20, 64  }
 0x126   : > { %720 = vsyncadd (!%p574_p9), %s455_s20, 4294967232  ;;  %s23_s26 = sadd.s32 1, %s743_s26   ;;  %s957_s21 = smov %s727_s22 }
 0x127   : > { %p20_p10 = scmp.ge.s32.totalorder %s23_s26, 4   ;;  %s958_s22 = smov %s731_s23 }
 0x128   : > { %s959_s23 = smov %s838_s10  ;;  %s960_s24 = smov %s739_s25 }
 0x129   : > { %s961_s25 = smov %s963_s29  ;;  %22 = sbr.rel (!%p20_p10) target bundleno = 6 (0x6), region = 92 }
 0x130   :  { %460 = vsyncpa [#allocation3], 1 }
 0x131   :  { %462 = vsyncpa [#allocation3 + $0x1], 1 }
 0x132   :  { %463 = vsyncpa [#allocation5], 1 }
 0x133   :  { %465 = vsyncpa [#allocation5 + $0x1], 1 }

</bundles_post_ra>
